<compile_context>
chip_gen: v5e
topology: v5e:2x2
jax: 0.10.0
libtpu: 0.0.40
codegen_flags: <defaults>
</compile_context>

<pallas_src>
import functools

import jax
import jax.numpy as jnp
from jax.experimental import pallas as pl
from jax.experimental.pallas import tpu as pltpu

BN_EPS = 1e-5
_INV_SQRT2 = 0.7071067811865476


def _gelu_exact(x):
    # torch.nn.GELU default: 0.5 * x * (1 + erf(x / sqrt(2)))
    return 0.5 * x * (1.0 + jax.lax.erf(x * jnp.float32(_INV_SQRT2)))


def _softplus(x):
    # torch.nn.Softplus(beta=1, threshold=20)
    return jnp.where(x > 20.0, x, jnp.log1p(jnp.exp(jnp.minimum(x, 20.0))))


def _bn_fold(sum_, sumsq, gamma, beta, inv_n):
    # Fold training-mode BatchNorm affine: y = x*scale + shift.
    # NOTE: single-pass E[x^2]-E[x]^2 variance; fine at these scales/tolerance.
    mean = sum_ * inv_n
    var = jnp.maximum(sumsq * inv_n - mean * mean, 0.0)
    scale = gamma * jax.lax.rsqrt(var + jnp.float32(BN_EPS))
    shift = beta - mean * scale
    return scale, shift


# --------------------------------------------------------------------------
# Path A: fully fused single-step kernel (everything resident in VMEM).
# --------------------------------------------------------------------------
def _fused_kernel(x_ref, w1_ref, g1_ref, be1_ref, w2_ref, g2_ref, be2_ref,
                  whead_ref, bhead_ref, out_ref, *, out_dim):
    inv_n = jnp.float32(1.0 / x_ref.shape[0])

    h = jnp.dot(x_ref[...], w1_ref[...], preferred_element_type=jnp.float32)
    s = jnp.sum(h, axis=0, keepdims=True)
    sq = jnp.sum(h * h, axis=0, keepdims=True)
    scale1, shift1 = _bn_fold(s, sq, g1_ref[...], be1_ref[...], inv_n)
    h = _gelu_exact(h * scale1 + shift1)

    h2 = jnp.dot(h, w2_ref[...], preferred_element_type=jnp.float32)
    s2 = jnp.sum(h2, axis=0, keepdims=True)
    sq2 = jnp.sum(h2 * h2, axis=0, keepdims=True)
    scale2, shift2 = _bn_fold(s2, sq2, g2_ref[...], be2_ref[...], inv_n)
    h2 = _gelu_exact(h2 * scale2 + shift2)

    z = jnp.dot(h2, whead_ref[...], preferred_element_type=jnp.float32)
    z = z + bhead_ref[...]
    lane = jax.lax.broadcasted_iota(jnp.int32, z.shape, 1)
    out_ref[...] = jnp.where(lane < out_dim, z, _softplus(z))


# --------------------------------------------------------------------------
# Path B: 3-phase batch-tiled kernel (full-batch BN stats stay bit-correct).
#   phase 0: x-tile @ W1 -> BN1 partial sum/sumsq (h1 NOT kept)
#   phase 1: recompute x@W1, BN1+GELU, @ W2 -> h2 scratch, BN2 partial stats
#   phase 2: BN2+GELU, fused head matmul (+softplus lane-select) -> out tile
# --------------------------------------------------------------------------
def _tiled_kernel(x_ref, w1_ref, g1_ref, be1_ref, w2_ref, g2_ref, be2_ref,
                  whead_ref, bhead_ref, out_ref,
                  h2_buf, sum1_buf, sq1_buf, sc1_buf, sum2_buf, sq2_buf, sc2_buf,
                  *, tb, out_dim):
    p = pl.program_id(0)          # phase: 0,1,2
    i = pl.program_id(1)          # batch tile
    row0 = pl.multiple_of(i * tb, tb)
    nsub = tb // 8
    inv_n = jnp.float32(1.0 / h2_buf.shape[0])    # 1 / full batch size

    @pl.when(p == 0)
    def _phase0():
        @pl.when(i == 0)
        def _init():
            sum1_buf[...] = jnp.zeros_like(sum1_buf)
            sq1_buf[...] = jnp.zeros_like(sq1_buf)

        h = jnp.dot(x_ref[...], w1_ref[...], preferred_element_type=jnp.float32)
        hp = h.reshape(nsub, 8, h.shape[1])
        # Full-sublane partial accumulators: plain VPU adds, no per-tile XLU
        # reduce and no masked 1-sublane stores on the critical path.
        sum1_buf[...] += jnp.sum(hp, axis=0)
        sq1_buf[...] += jnp.sum(hp * hp, axis=0)

    @pl.when(p == 1)
    def _phase1():
        @pl.when(i == 0)
        def _fold1():
            s = jnp.sum(sum1_buf[...], axis=0, keepdims=True)
            ss = jnp.sum(sq1_buf[...], axis=0, keepdims=True)
            scale, shift = _bn_fold(s, ss, g1_ref[...], be1_ref[...], inv_n)
            sc1_buf[0:1, :] = scale
            sc1_buf[1:2, :] = shift
            sum2_buf[...] = jnp.zeros_like(sum2_buf)
            sq2_buf[...] = jnp.zeros_like(sq2_buf)

        # Recompute x@W1 instead of keeping a [B, H] h1 buffer resident
        # (in_dim is small, so the recompute is cheap and frees 4*B*H bytes).
        h = jnp.dot(x_ref[...], w1_ref[...], preferred_element_type=jnp.float32)
        h = _gelu_exact(h * sc1_buf[0:1, :] + sc1_buf[1:2, :])
        h2 = jnp.dot(h, w2_ref[...], preferred_element_type=jnp.float32)
        h2_buf[pl.ds(row0, tb), :] = h2
        hp = h2.reshape(nsub, 8, h2.shape[1])
        sum2_buf[...] += jnp.sum(hp, axis=0)
        sq2_buf[...] += jnp.sum(hp * hp, axis=0)

    @pl.when(p == 2)
    def _phase2():
        @pl.when(i == 0)
        def _fold2():
            s = jnp.sum(sum2_buf[...], axis=0, keepdims=True)
            ss = jnp.sum(sq2_buf[...], axis=0, keepdims=True)
            scale, shift = _bn_fold(s, ss, g2_ref[...], be2_ref[...], inv_n)
            sc2_buf[0:1, :] = scale
            sc2_buf[1:2, :] = shift

        h2 = h2_buf[pl.ds(row0, tb), :]
        h2 = _gelu_exact(h2 * sc2_buf[0:1, :] + sc2_buf[1:2, :])
        z = jnp.dot(h2, whead_ref[...], preferred_element_type=jnp.float32)
        z = z + bhead_ref[...]
        lane = jax.lax.broadcasted_iota(jnp.int32, z.shape, 1)
        out_ref[...] = jnp.where(lane < out_dim, z, _softplus(z))


# --------------------------------------------------------------------------
# Wrapper
# --------------------------------------------------------------------------
def _vmem_capacity_bytes():
    try:
        info = pltpu.get_tpu_info()
        cap = getattr(info, "vmem_capacity_bytes", None)
        if cap:
            return int(cap)
    except Exception:
        pass
    return 64 * 1024 * 1024   # conservative: v7x per-TensorCore VMEM


def _pick_batch_tile(B):
    # Prefer MXU-filling tiles (M=256 on v6e/v7x, 128 on v5e); always mult of 8.
    for tb in (256, 512, 128, 64, 32, 16, 8):
        if B % tb == 0:
            return tb
    raise ValueError("batch size must be a multiple of 8 for the tiled path")


def _resident(a):
    zeros = (0,) * a.ndim
    return pl.BlockSpec(a.shape, lambda p, i, _z=zeros: _z)


def _prepare_params(params):
    """Fuse heads and zero-pad the out_dim axis to a multiple of 128 lanes."""
    out_dim = params["wmu"].shape[1]
    out_pad = ((out_dim + 127) // 128) * 128
    pad = out_pad - out_dim
    w2, g2, be2 = params["w2"], params["g2"], params["be2"]
    wmu, wsc = params["wmu"], params["wsc"]
    if pad:
        # Padded lanes: gamma=0, beta=0 -> BN output 0 -> GELU 0; padded head
        # rows are 0 -> no contribution.  Math stays exact.
        w2 = jnp.pad(w2, ((0, 0), (0, pad)))
        g2 = jnp.pad(g2, ((0, 0), (0, pad)))
        be2 = jnp.pad(be2, ((0, 0), (0, pad)))
        wmu = jnp.pad(wmu, ((0, pad), (0, 0)))
        wsc = jnp.pad(wsc, ((0, pad), (0, 0)))
    whead = jnp.concatenate([wmu, wsc], axis=1)                       # (out_pad, 2*out)
    bhead = jnp.concatenate([params["bmu"], params["bsc"]], axis=1)   # (1, 2*out)
    return w2, g2, be2, whead, bhead, out_pad


def shared_qz_inference_mlp(x, params, tile_b=None, force_tiled=False):
    """x: [B, in_dim] float32. Returns (z_mu, z_sca), each [B, out_dim]."""
    B, in_dim = x.shape
    H = params["w1"].shape[1]
    out_dim = params["wmu"].shape[1]
    two_out = 2 * out_dim

    w2, g2, be2, whead, bhead, out_pad = _prepare_params(params)
    # b1/b2 dropped: a bias added right before training-mode BatchNorm is
    # exactly canceled by the mean subtraction.
    inputs = (x, params["w1"], params["g1"], params["be1"],
              w2, g2, be2, whead, bhead)

    param_bytes = 4 * sum(int(a.size) for a in inputs[1:])
    x_bytes = 4 * int(x.size)
    out_bytes = 4 * B * two_out

    cap = _vmem_capacity_bytes()
    budget = int(0.7 * cap)

    # Fully-resident need: operands + output + (x2 slack) intermediates.
    fused_need = (param_bytes + x_bytes + out_bytes
                  + 8 * B * (H + out_pad + two_out)
                  + (2 << 20))
    use_tiled = force_tiled or fused_need > budget

    flops = 2 * B * (in_dim * H * (2 if use_tiled else 1)
                     + H * out_pad + out_pad * two_out)
    transcendentals = B * (H + out_pad + two_out)
    cost = pl.CostEstimate(flops=flops, transcendentals=transcendentals,
                           bytes_accessed=param_bytes + x_bytes + out_bytes)

    if not use_tiled:
        vmem_limit = int(min(max(fused_need, 32 << 20), int(0.75 * cap)))
        fused = pl.pallas_call(
            functools.partial(_fused_kernel, out_dim=out_dim),
            out_shape=jax.ShapeDtypeStruct((B, two_out), jnp.float32),
            compiler_params=pltpu.CompilerParams(vmem_limit_bytes=vmem_limit),
            cost_estimate=cost,
        )(*inputs)
        return fused[:, :out_dim], fused[:, out_dim:]

    # ---------------- tiled path ----------------
    if tile_b is None:
        tile_b = _pick_batch_tile(B)
    else:
        assert tile_b % 8 == 0 and B % tile_b == 0, \
            "tile_b must be a multiple of 8 and divide B"
        if B >= 256 and tile_b < 128:
            # Refuse MXU-starving tiles for large batches.
            tile_b = _pick_batch_tile(B)
    nb = B // tile_b

    tiled_need = (2 * param_bytes                                 # resident (dbl-buffered)
                  + 2 * 4 * tile_b * (in_dim + two_out)           # x / out tiles
                  + 4 * B * out_pad                               # h2 scratch
                  + 8 * tile_b * (H + out_pad + two_out)          # temporaries (x2 slack)
                  + 4 * (18 * H + 18 * out_pad)                   # stat / fold scratch
                  + (2 << 20))
    if tiled_need > int(0.75 * cap):
        # TODO(synk): stream h2 through HBM with manual double-buffered DMA.
        raise ValueError(
            f"batch {B} too large for VMEM ({tiled_need} > {int(0.75 * cap)} bytes); "
            "HBM-streaming path not implemented")
    vmem_limit = int(min(max(tiled_need, 32 << 20), int(0.75 * cap)))

    in_specs = ([pl.BlockSpec((tile_b, in_dim), lambda p, i: (i, 0))]
                + [_resident(a) for a in inputs[1:]])
    # Phase-aware output map: stay at block (0,0) for phases 0/1 (never
    # written), move per-tile in phase 2 so tiles are written back as produced.
    out_spec = pl.BlockSpec((tile_b, two_out), lambda p, i: (i * (p // 2), 0))

    fused = pl.pallas_call(
        functools.partial(_tiled_kernel, tb=tile_b, out_dim=out_dim),
        out_shape=jax.ShapeDtypeStruct((B, two_out), jnp.float32),
        grid=(3, nb),
        in_specs=in_specs,
        out_specs=out_spec,
        scratch_shapes=[
            pltpu.VMEM((B, out_pad), jnp.float32),   # h2 (full batch)
            pltpu.VMEM((8, H), jnp.float32),         # BN1 partial sum
            pltpu.VMEM((8, H), jnp.float32),         # BN1 partial sumsq
            pltpu.VMEM((2, H), jnp.float32),         # BN1 folded scale/shift
            pltpu.VMEM((8, out_pad), jnp.float32),   # BN2 partial sum
            pltpu.VMEM((8, out_pad), jnp.float32),   # BN2 partial sumsq
            pltpu.VMEM((2, out_pad), jnp.float32),   # BN2 folded scale/shift
        ],
        compiler_params=pltpu.CompilerParams(
            # BN stats accumulate sequentially across batch tiles -> arbitrary.
            dimension_semantics=("arbitrary", "arbitrary"),
            vmem_limit_bytes=vmem_limit,
        ),
        cost_estimate=cost,
    )(*inputs)

    return fused[:, :out_dim], fused[:, out_dim:]


# --------------------------------------------------------------------------
# Params / reference / demo
# --------------------------------------------------------------------------
def init_params(key, in_dim, hidden_dim, out_dim):
    ks = jax.random.split(key, 8)
    scale = 0.05
    return {
        # Linear weights stored as [in, out] (pre-transposed vs torch [out, in]).
        "w1": (scale * jax.random.normal(ks[0], (in_dim, hidden_dim))).astype(jnp.float32),
        "b1": (scale * jax.random.normal(ks[1], (1, hidden_dim))).astype(jnp.float32),
        "g1": jnp.ones((1, hidden_dim), jnp.float32),
        "be1": jnp.zeros((1, hidden_dim), jnp.float32),
        "w2": (scale * jax.random.normal(ks[2], (hidden_dim, out_dim))).astype(jnp.float32),
        "b2": (scale * jax.random.normal(ks[3], (1, out_dim))).astype(jnp.float32),
        "g2": jnp.ones((1, out_dim), jnp.float32),
        "be2": jnp.zeros((1, out_dim), jnp.float32),
        "wmu": (scale * jax.random.normal(ks[4], (out_dim, out_dim))).astype(jnp.float32),
        "bmu": (scale * jax.random.normal(ks[5], (1, out_dim))).astype(jnp.float32),
        "wsc": (scale * jax.random.normal(ks[6], (out_dim, out_dim))).astype(jnp.float32),
        "bsc": (scale * jax.random.normal(ks[7], (1, out_dim))).astype(jnp.float32),
    }


def _batchnorm_ref(x, gamma, beta):
    mean = jnp.mean(x, axis=0, keepdims=True)
    var = jnp.mean((x - mean) * (x - mean), axis=0, keepdims=True)
    return (x - mean) * jax.lax.rsqrt(var + BN_EPS) * gamma + beta


def reference_forward(x, p):
    # Pure-JAX reference following torch layer-by-layer (incl. the b1/b2 biases
    # that the kernel drops because training-mode BN cancels them).
    h = x @ p["w1"] + p["b1"]
    h = _gelu_exact(_batchnorm_ref(h, p["g1"], p["be1"]))
    h = h @ p["w2"] + p["b2"]
    h = _gelu_exact(_batchnorm_ref(h, p["g2"], p["be2"]))
    z_mu = h @ p["wmu"] + p["bmu"]
    z_sca = _softplus(h @ p["wsc"] + p["bsc"])
    return z_mu, z_sca


if __name__ == "__main__":
    B, IN_DIM, HIDDEN, OUT_DIM = 16, 32, 128, 64

    key = jax.random.PRNGKey(0)
    k_x, k_p = jax.random.split(key)
    x = jax.random.normal(k_x, (B, IN_DIM), dtype=jnp.float32)
    params = init_params(k_p, IN_DIM, HIDDEN, OUT_DIM)

    r_mu, r_sca = reference_forward(x, params)

    # Path A: fully fused single-step kernel (selected automatically here).
    z_mu, z_sca = shared_qz_inference_mlp(x, params)
    z_mu, z_sca = jax.block_until_ready((z_mu, z_sca))
    assert z_mu.shape == (B, OUT_DIM) and z_sca.shape == (B, OUT_DIM)
    assert jnp.allclose(z_mu, r_mu, atol=1e-4, rtol=1e-4)
    assert jnp.allclose(z_sca, r_sca, atol=1e-4, rtol=1e-4)
    assert bool(jnp.all(z_sca > 0))  # softplus positivity

    # Path B: force the 3-phase batch-tiled kernel with 2 tiles to exercise
    # the cross-tile (full-batch) BN statistics path.
    t_mu, t_sca = shared_qz_inference_mlp(x, params, tile_b=8, force_tiled=True)
    t_mu, t_sca = jax.block_until_ready((t_mu, t_sca))
    assert jnp.allclose(t_mu, r_mu, atol=1e-4, rtol=1e-4)
    assert jnp.allclose(t_sca, r_sca, atol=1e-4, rtol=1e-4)

    print("KERNEL_OK")
</pallas_src>

<mosaic_0001>
module attributes {stable_mosaic.version = 11 : i64} {
  func.func @_fused_kernel(%arg0: memref<16x32xf32, #tpu.memory_space<vmem>>, %arg1: memref<32x128xf32, #tpu.memory_space<vmem>>, %arg2: memref<1x128xf32, #tpu.memory_space<vmem>>, %arg3: memref<1x128xf32, #tpu.memory_space<vmem>>, %arg4: memref<128x128xf32, #tpu.memory_space<vmem>>, %arg5: memref<1x128xf32, #tpu.memory_space<vmem>>, %arg6: memref<1x128xf32, #tpu.memory_space<vmem>>, %arg7: memref<128x128xf32, #tpu.memory_space<vmem>>, %arg8: memref<1x128xf32, #tpu.memory_space<vmem>>, %arg9: memref<16x128xf32, #tpu.memory_space<vmem>>) attributes {dimension_semantics = [], scalar_prefetch = 0 : i64, scratch_operands = 0 : i64, tpu.core_type = #tpu.core_type<tc>} {
    %c0 = arith.constant 0 : index
    %c0_0 = arith.constant 0 : index
    %0 = vector.load %arg0[%c0, %c0_0] : memref<16x32xf32, #tpu.memory_space<vmem>>, vector<16x32xf32>
    %c0_1 = arith.constant 0 : index
    %c0_2 = arith.constant 0 : index
    %1 = vector.load %arg1[%c0_1, %c0_2] : memref<32x128xf32, #tpu.memory_space<vmem>>, vector<32x128xf32>
    %cst = arith.constant dense<0.000000e+00> : vector<16x128xf32>
    %2 = tpu.matmul %0, %1, %cst {dimension_numbers = #tpu.dot_dimension_numbers<[1], [0], [0], [1], [0, 0, 1, 1], [], []>} : vector<16x32xf32>, vector<32x128xf32>, vector<16x128xf32> -> vector<16x128xf32>
    %cst_3 = arith.constant dense<0.000000e+00> : vector<128xf32>
    %3 = vector.multi_reduction <add>, %2, %cst_3 [0] : vector<16x128xf32> to vector<128xf32>
    %4 = vector.shape_cast %3 : vector<128xf32> to vector<1x128xf32>
    %5 = arith.mulf %2, %2 : vector<16x128xf32>
    %cst_4 = arith.constant dense<0.000000e+00> : vector<128xf32>
    %6 = vector.multi_reduction <add>, %5, %cst_4 [0] : vector<16x128xf32> to vector<128xf32>
    %7 = vector.shape_cast %6 : vector<128xf32> to vector<1x128xf32>
    %c0_5 = arith.constant 0 : index
    %c0_6 = arith.constant 0 : index
    %8 = vector.load %arg2[%c0_5, %c0_6] : memref<1x128xf32, #tpu.memory_space<vmem>>, vector<1x128xf32>
    %c0_7 = arith.constant 0 : index
    %c0_8 = arith.constant 0 : index
    %9 = vector.load %arg3[%c0_7, %c0_8] : memref<1x128xf32, #tpu.memory_space<vmem>>, vector<1x128xf32>
    %cst_9 = arith.constant 6.250000e-02 : f32
    %10 = vector.broadcast %cst_9 : f32 to vector<1x128xf32>
    %11 = arith.mulf %4, %10 : vector<1x128xf32>
    %cst_10 = arith.constant 6.250000e-02 : f32
    %12 = vector.broadcast %cst_10 : f32 to vector<1x128xf32>
    %13 = arith.mulf %7, %12 : vector<1x128xf32>
    %14 = arith.mulf %11, %11 : vector<1x128xf32>
    %15 = arith.subf %13, %14 : vector<1x128xf32>
    %cst_11 = arith.constant 0.000000e+00 : f32
    %16 = vector.broadcast %cst_11 : f32 to vector<1x128xf32>
    %17 = arith.maximumf %15, %16 : vector<1x128xf32>
    %cst_12 = arith.constant 9.99999974E-6 : f32
    %18 = vector.broadcast %cst_12 : f32 to vector<1x128xf32>
    %19 = arith.addf %17, %18 : vector<1x128xf32>
    %20 = math.rsqrt %19 : vector<1x128xf32>
    %21 = arith.mulf %8, %20 : vector<1x128xf32>
    %22 = arith.mulf %11, %21 : vector<1x128xf32>
    %23 = arith.subf %9, %22 : vector<1x128xf32>
    %24 = vector.broadcast %21 : vector<1x128xf32> to vector<16x128xf32>
    %25 = arith.mulf %2, %24 : vector<16x128xf32>
    %26 = vector.broadcast %23 : vector<1x128xf32> to vector<16x128xf32>
    %27 = arith.addf %25, %26 : vector<16x128xf32>
    %cst_13 = arith.constant 5.000000e-01 : f32
    %28 = vector.broadcast %cst_13 : f32 to vector<16x128xf32>
    %29 = arith.mulf %28, %27 : vector<16x128xf32>
    %cst_14 = arith.constant 0.707106769 : f32
    %30 = vector.broadcast %cst_14 : f32 to vector<16x128xf32>
    %31 = arith.mulf %27, %30 : vector<16x128xf32>
    %32 = math.erf %31 : vector<16x128xf32>
    %cst_15 = arith.constant 1.000000e+00 : f32
    %33 = vector.broadcast %cst_15 : f32 to vector<16x128xf32>
    %34 = arith.addf %33, %32 : vector<16x128xf32>
    %35 = arith.mulf %29, %34 : vector<16x128xf32>
    %c0_16 = arith.constant 0 : index
    %c0_17 = arith.constant 0 : index
    %36 = vector.load %arg4[%c0_16, %c0_17] : memref<128x128xf32, #tpu.memory_space<vmem>>, vector<128x128xf32>
    %cst_18 = arith.constant dense<0.000000e+00> : vector<16x128xf32>
    %37 = tpu.matmul %35, %36, %cst_18 {dimension_numbers = #tpu.dot_dimension_numbers<[1], [0], [0], [1], [0, 0, 1, 1], [], []>} : vector<16x128xf32>, vector<128x128xf32>, vector<16x128xf32> -> vector<16x128xf32>
    %cst_19 = arith.constant dense<0.000000e+00> : vector<128xf32>
    %38 = vector.multi_reduction <add>, %37, %cst_19 [0] : vector<16x128xf32> to vector<128xf32>
    %39 = vector.shape_cast %38 : vector<128xf32> to vector<1x128xf32>
    %40 = arith.mulf %37, %37 : vector<16x128xf32>
    %cst_20 = arith.constant dense<0.000000e+00> : vector<128xf32>
    %41 = vector.multi_reduction <add>, %40, %cst_20 [0] : vector<16x128xf32> to vector<128xf32>
    %42 = vector.shape_cast %41 : vector<128xf32> to vector<1x128xf32>
    %c0_21 = arith.constant 0 : index
    %c0_22 = arith.constant 0 : index
    %43 = vector.load %arg5[%c0_21, %c0_22] : memref<1x128xf32, #tpu.memory_space<vmem>>, vector<1x128xf32>
    %c0_23 = arith.constant 0 : index
    %c0_24 = arith.constant 0 : index
    %44 = vector.load %arg6[%c0_23, %c0_24] : memref<1x128xf32, #tpu.memory_space<vmem>>, vector<1x128xf32>
    %cst_25 = arith.constant 6.250000e-02 : f32
    %45 = vector.broadcast %cst_25 : f32 to vector<1x128xf32>
    %46 = arith.mulf %39, %45 : vector<1x128xf32>
    %cst_26 = arith.constant 6.250000e-02 : f32
    %47 = vector.broadcast %cst_26 : f32 to vector<1x128xf32>
    %48 = arith.mulf %42, %47 : vector<1x128xf32>
    %49 = arith.mulf %46, %46 : vector<1x128xf32>
    %50 = arith.subf %48, %49 : vector<1x128xf32>
    %cst_27 = arith.constant 0.000000e+00 : f32
    %51 = vector.broadcast %cst_27 : f32 to vector<1x128xf32>
    %52 = arith.maximumf %50, %51 : vector<1x128xf32>
    %cst_28 = arith.constant 9.99999974E-6 : f32
    %53 = vector.broadcast %cst_28 : f32 to vector<1x128xf32>
    %54 = arith.addf %52, %53 : vector<1x128xf32>
    %55 = math.rsqrt %54 : vector<1x128xf32>
    %56 = arith.mulf %43, %55 : vector<1x128xf32>
    %57 = arith.mulf %46, %56 : vector<1x128xf32>
    %58 = arith.subf %44, %57 : vector<1x128xf32>
    %59 = vector.broadcast %56 : vector<1x128xf32> to vector<16x128xf32>
    %60 = arith.mulf %37, %59 : vector<16x128xf32>
    %61 = vector.broadcast %58 : vector<1x128xf32> to vector<16x128xf32>
    %62 = arith.addf %60, %61 : vector<16x128xf32>
    %cst_29 = arith.constant 5.000000e-01 : f32
    %63 = vector.broadcast %cst_29 : f32 to vector<16x128xf32>
    %64 = arith.mulf %63, %62 : vector<16x128xf32>
    %cst_30 = arith.constant 0.707106769 : f32
    %65 = vector.broadcast %cst_30 : f32 to vector<16x128xf32>
    %66 = arith.mulf %62, %65 : vector<16x128xf32>
    %67 = math.erf %66 : vector<16x128xf32>
    %cst_31 = arith.constant 1.000000e+00 : f32
    %68 = vector.broadcast %cst_31 : f32 to vector<16x128xf32>
    %69 = arith.addf %68, %67 : vector<16x128xf32>
    %70 = arith.mulf %64, %69 : vector<16x128xf32>
    %c0_32 = arith.constant 0 : index
    %c0_33 = arith.constant 0 : index
    %71 = vector.load %arg7[%c0_32, %c0_33] : memref<128x128xf32, #tpu.memory_space<vmem>>, vector<128x128xf32>
    %cst_34 = arith.constant dense<0.000000e+00> : vector<16x128xf32>
    %72 = tpu.matmul %70, %71, %cst_34 {dimension_numbers = #tpu.dot_dimension_numbers<[1], [0], [0], [1], [0, 0, 1, 1], [], []>} : vector<16x128xf32>, vector<128x128xf32>, vector<16x128xf32> -> vector<16x128xf32>
    %c0_35 = arith.constant 0 : index
    %c0_36 = arith.constant 0 : index
    %73 = vector.load %arg8[%c0_35, %c0_36] : memref<1x128xf32, #tpu.memory_space<vmem>>, vector<1x128xf32>
    %74 = vector.broadcast %73 : vector<1x128xf32> to vector<16x128xf32>
    %75 = arith.addf %72, %74 : vector<16x128xf32>
    %76 = tpu.iota {dimensions = array<i32: 1>} : vector<16x128xi32>
    %c64_i32 = arith.constant 64 : i32
    %77 = vector.broadcast %c64_i32 : i32 to vector<16x128xi32>
    %78 = arith.cmpi slt, %76, %77 : vector<16x128xi32>
    %cst_37 = arith.constant 2.000000e+01 : f32
    %79 = vector.broadcast %cst_37 : f32 to vector<16x128xf32>
    %80 = arith.cmpf ogt, %75, %79 : vector<16x128xf32>
    %cst_38 = arith.constant 2.000000e+01 : f32
    %81 = vector.broadcast %cst_38 : f32 to vector<16x128xf32>
    %82 = arith.minimumf %75, %81 : vector<16x128xf32>
    %83 = math.exp %82 : vector<16x128xf32>
    %84 = math.log1p %83 : vector<16x128xf32>
    %85 = arith.select %80, %75, %84 : vector<16x128xi1>, vector<16x128xf32>
    %86 = arith.select %78, %75, %85 : vector<16x128xi1>, vector<16x128xf32>
    %c0_39 = arith.constant 0 : index
    %c0_40 = arith.constant 0 : index
    %87 = vector.load %arg9[%c0_39, %c0_40] : memref<16x128xf32, #tpu.memory_space<vmem>>, vector<16x128xf32>
    tpu.vector_store %arg9[%c0_39, %c0_40], %86 {strides = array<i32>} : memref<16x128xf32, #tpu.memory_space<vmem>>, vector<16x128xf32>,
    return
  }
}

</mosaic_0001>

<bundles_post_ra>
// kernel: tpu_custom_call.1
= control target key start
LH: loop header
LB: loop body
LE: loop exit
PB: predicated region body
PF: predicated region fallthrough
CT: control target
= control target key end

     0   :  { %14 = vsyncpa [#allocation3], 0  ;;  %s882_s0 = inlined_call_operand.hbm [shape: f32[16,32], index: 0, kind: input, shape index: {}]   ;;  %s883_s1 = inlined_call_operand.hbm [shape: f32[32,128], index: 1, kind: input, shape index: {}]   ;;  %s884_s2 = inlined_call_operand.vmem [shape: f32[1,128], index: 2, kind: input, shape index: {}]   ;;  %s885_s3 = inlined_call_operand.vmem [shape: f32[1,128], index: 3, kind: input, shape index: {}]   ;;  %s886_s4 = inlined_call_operand.hbm [shape: f32[128,128], index: 4, kind: input, shape index: {}]   ;;  %s887_s5 = inlined_call_operand.vmem [shape: f32[1,128], index: 5, kind: input, shape index: {}]   ;;  %s888_s6 = inlined_call_operand.vmem [shape: f32[1,128], index: 6, kind: input, shape index: {}]   ;;  %s889_s7 = inlined_call_operand.hbm [shape: f32[128,128], index: 7, kind: input, shape index: {}]   ;;  %s890_s8 = inlined_call_operand.vmem [shape: f32[1,128], index: 8, kind: input, shape index: {}]   ;;  %s891_s9 = inlined_call_operand.hbm [shape: f32[16,128], index: 9, kind: output, shape index: {}]  }
   0x1   :  { %15 = vsyncpa [#allocation6], 0 }
   0x2   :  { %16 = vsyncpa [#allocation9], 0 }
   0x3   :  { %17 = vsyncpa [#allocation4], 0  ;;  %s35_s11 = sshll.u32 %s883_s1, 4  ;;  %s718_s12 = smov [#allocation5]   ;;  %s36_s11 = int_to_ptr.hbm [resolvable:$true] %s35_s11 }
   0x4   :  { %s37_s13 = sshll.u32 %s718_s12, 4  ;;  %s22_s16 = sshll.u32 %s882_s0, 4  ;;  %s38_s13 = int_to_ptr.vmem [resolvable:$true] %s37_s13  ;;  %s23_s16 = int_to_ptr.hbm [resolvable:$true] %s22_s16 }
   0x5   :  { %s719_s17 = smov 128   ;;  %s720_s18 = smov 8  }
   0x6   :  { %43 = dma.hbm_to_vmem [thread:$0]  %s36_s11, 512, %s38_s13, [#allocation6], %s719_s17, %s719_s17, %s720_s18  }
   0x7   :  { %s721_s19 = smov [#allocation2]   ;;  %s52_s1 = sshll.u32 %s886_s4, 4  ;;  %s53_s1 = int_to_ptr.hbm [resolvable:$true] %s52_s1 }
   0x8   :  { %s24_s20 = sshll.u32 %s721_s19, 4  ;;  %s69_s24 = sshll.u32 %s889_s7, 4  ;;  %s25_s20 = int_to_ptr.vmem [resolvable:$true] %s24_s20  ;;  %s70_s24 = int_to_ptr.hbm [resolvable:$true] %s69_s24 }
   0x9   :  { %30 = dma.hbm_to_vmem [thread:$0]  %s23_s16, 256, %s25_s20, [#allocation3], %s719_s17, %s719_s17, %s720_s18  }
   0xa   :  { %s722_s25 = smov [#allocation7]   ;;  %s723_s27 = smov [#allocation8]  }
   0xb   :  { %s54_s26 = sshll.u32 %s722_s25, 4  ;;  %s71_s4 = sshll.u32 %s723_s27, 4  ;;  %s55_s26 = int_to_ptr.vmem [resolvable:$true] %s54_s26  ;;  %s72_s4 = int_to_ptr.vmem [resolvable:$true] %s71_s4 }
   0xc   :  { %60 = dma.hbm_to_vmem [thread:$0]  %s53_s1, 2048, %s55_s26, [#allocation6], %s719_s17, %s719_s17, %s720_s18  }
   0xd   :  { %77 = dma.hbm_to_vmem [thread:$0]  %s70_s24, 2048, %s72_s4, [#allocation9], %s719_s17, %s719_s17, %s720_s18  }
   0xe   :  { %710 = dma.done.wait [#allocation3], 256  }
   0xf   :  { %711 = vsyncadd [#allocation3], 4294967040 }
  0x10   :  { %712 = dma.done.wait [#allocation6], 2560  }
  0x11   :  { %713 = vsyncadd [#allocation6], 4294964736 }
  0x12   :  { %714 = dma.done.wait [#allocation9], 2048  }
  0x13   :  { %715 = vsyncadd [#allocation9], 4294965248  ;;  %v101_v0 = vld [vmem:[#allocation5 + $0x18] sm:$0xff]  ;;  %v100_v1 = vld [vmem:[#allocation5 + $0x10] sm:$0xff]  ;;  %vm102_vm0 = vcmask 261120   ;;  %s525_s15 = sshll.u32 %s891_s9, 4  ;;  %s526_s15 = int_to_ptr.hbm [resolvable:$true] %s525_s15 }
  0x14   :  { %121 = vmatpush.msra.mxu0 %v101_v0  ;;  %v99_v2 = vld [vmem:[#allocation5 + $0x8] sm:$0xff]  ;;  %v98_v3 = vld [vmem:[#allocation5] sm:$0xff]  ;;  %v96_v4 = vld [vmem:[#allocation2] sm:$0xff] }
  0x15   :  { %v97_v5 = vld [vmem:[#allocation2 + $0x8] sm:$0xff]  ;;  %v281_v31 = vld [vmem:[#allocation7 + $0x70] sm:$0xff]  ;;  %v280_v32 = vld [vmem:[#allocation7 + $0x68] sm:$0xff] }
  0x16   :  { %122 = vmatpush.msra.mxu0 %v100_v1  ;;  %v282_v30 = vld [vmem:[#allocation7 + $0x78] sm:$0xff]  ;;  %v279_v33 = vld [vmem:[#allocation7 + $0x60] sm:$0xff]  ;;  %v277_v37 = vld [vmem:[#allocation7 + $0x50] sm:$0xff] }
  0x17   :  { %283 = vmatpush.msra.mxu1 %v282_v30  ;;  %546 = vmatpush.msra.mxu3 %v282_v30  ;;  %v278_v35 = vld [vmem:[#allocation7 + $0x58] sm:$0xff]  ;;  %v276_v39 = vld [vmem:[#allocation7 + $0x48] sm:$0xff]  ;;  %v275_v41 = vld [vmem:[#allocation7 + $0x40] sm:$0xff] }
  0x18   :  { %123 = vmatpush.msra.mxu0 %v99_v2  ;;  %v274_v43 = vld [vmem:[#allocation7 + $0x38] sm:$0xff]  ;;  %v148_v44 = vld [vmem:[%s884_s2] sm:$0x1]  ;;  %v272_v49 = vld [vmem:[#allocation7 + $0x28] sm:$0xff] }
  0x19   :  { %284 = vmatpush.msra.mxu1 %v281_v31  ;;  %547 = vmatpush.msra.mxu3 %v281_v31  ;;  %v273_v46 = vld [vmem:[#allocation7 + $0x30] sm:$0xff]  ;;  %v271_v53 = vld [vmem:[#allocation7 + $0x20] sm:$0xff]  ;;  %v270_v55 = vld [vmem:[#allocation7 + $0x18] sm:$0xff] }
  0x1a   :  { %124 = vmatpush.msra.mxu0 %v98_v3  ;;  %v149_v50 = vld [vmem:[%s885_s3] sm:$0x1]  ;;  %v268_v61 = vld [vmem:[#allocation7 + $0x8] sm:$0xff]  ;;  %v267_v0 = vld [vmem:[#allocation7] sm:$0xff] }
  0x1b   :  { %540 = vmatmul.msk.f32.vlgmr.msra.gmra.mxu0 %vm102_vm0, %v96_v4  ;;  %285 = vmatpush.msra.mxu1 %v280_v32  ;;  %v269_v59 = vld [vmem:[#allocation7 + $0x10] sm:$0xff] }
  0x1c   :  { %548 = vmatpush.msra.mxu3 %v280_v32 }
  0x1d   :  { %286 = vmatpush.msra.mxu1 %v279_v33 }
  0x1e   :  { %549 = vmatpush.msra.mxu3 %v279_v33 }
  0x1f   :  { %287 = vmatpush.msra.mxu1 %v278_v35 }
  0x20   :  { %550 = vmatpush.msra.mxu3 %v278_v35 }
  0x21   :  { %288 = vmatpush.msra.mxu1 %v277_v37 }
  0x22   :  { %551 = vmatpush.msra.mxu3 %v277_v37 }
  0x23   :  { %541 = vmatmul.msk.f32.gmra.mxu0 %vm102_vm0, %v97_v5  ;;  %289 = vmatpush.msra.mxu1 %v276_v39 }
  0x24   :  { %552 = vmatpush.msra.mxu3 %v276_v39 }
  0x25   :  { %290 = vmatpush.msra.mxu1 %v275_v41 }
  0x26   :  { %553 = vmatpush.msra.mxu3 %v275_v41 }
  0x27   :  { %291 = vmatpush.msra.mxu1 %v274_v43 }
  0x28   :  { %554 = vmatpush.msra.mxu3 %v274_v43 }
  0x29   :  { %292 = vmatpush.msra.mxu1 %v273_v46 }
  0x2a   :  { %555 = vmatpush.msra.mxu3 %v273_v46 }
  0x2b   :  { %293 = vmatpush.msra.mxu1 %v272_v49 }
  0x2c   :  { %556 = vmatpush.msra.mxu3 %v272_v49 }
  0x2d   :  { %294 = vmatpush.msra.mxu1 %v271_v53 }
  0x2e   :  { %557 = vmatpush.msra.mxu3 %v271_v53 }
  0x2f   :  { %295 = vmatpush.msra.mxu1 %v270_v55 }
  0x30   :  { %558 = vmatpush.msra.mxu3 %v270_v55 }
  0x31   :  { %296 = vmatpush.msra.mxu1 %v269_v59 }
  0x32   :  { %559 = vmatpush.msra.mxu3 %v269_v59 }
  0x33   :  { %297 = vmatpush.msra.mxu1 %v268_v61 }
  0x34   :  { %560 = vmatpush.msra.mxu3 %v268_v61 }
  0x35   :  { %298 = vmatpush.msra.mxu1 %v267_v0 }
  0x36   :  { %561 = vmatpush.msra.mxu3 %v267_v0 }
  0x98   :  { %v799_v6 = vpop.f32.mrf.mxu0 }
  0x99   :  { %v139_v8 = vmul.f32 %v799_v6, %v799_v6 }
  0xa0   :  { %v801_v7 = vpop.f32.mrf.mxu0 }
  0xa1   :  { %v132_v9 = vadd.f32 %v801_v7, %v799_v6  ;;  %v140_v10 = vmul.f32 %v801_v7, %v801_v7 }
  0xa3   :  { %v133_v11 = vrot.slane %v132_v9, 4  ;;  %v141_v12 = vadd.f32 %v140_v10, %v139_v8 }
  0xa5   :  { %v134_v13 = vadd.f32 %v133_v11, %v132_v9  ;;  %v142_v14 = vrot.slane %v141_v12, 4 }
  0xa7   :  { %v135_v15 = vrot.slane %v134_v13, 2  ;;  %v143_v16 = vadd.f32 %v142_v14, %v141_v12 }
  0xa9   :  { %v136_v17 = vadd.f32 %v135_v15, %v134_v13  ;;  %v144_v18 = vrot.slane %v143_v16, 2 }
  0xab   :  { %v137_v19 = vrot.slane %v136_v17, 1  ;;  %v145_v20 = vadd.f32 %v144_v18, %v143_v16 }
  0xad   :  { %v138_v21 = vadd.f32 %v137_v19, %v136_v17  ;;  %v146_v22 = vrot.slane %v145_v20, 1 }
  0xaf   :  { %v147_v23 = vadd.f32 %v146_v22, %v145_v20  ;;  %v150_v24 = vmul.f32 0.0625, %v138_v21 }
  0xb1   :  { %v151_v25 = vmul.f32 0.0625, %v147_v23  ;;  %v152_v26 = vmul.f32 %v150_v24, %v150_v24 }
  0xb3   :  { %v153_v27 = vsub.f32 %v151_v25, %v152_v26 }
  0xb5   :  { %v154_v28 = vmax.f32 %v153_v27, 0.0 }
  0xb7   :  { %v155_v29 = vadd.f32 1e-05, %v154_v28 }
  0xb9   :  { %570 = vrsqrt.f32 %v155_v29  ;;  %vm162_vm2 = vweird.f32 %v155_v29 }
  0xbf   :  { %v571_v34 = vpop.eup %570 }
  0xc0   :  { %v157_v36 = vmul.f32 %v571_v34, %v155_v29  ;;  %vm163_vm1 = vweird.f32 %v571_v34 }
  0xc1   :  { %vm164_vm3 = vmor %vm162_vm2, %vm163_vm1 }
  0xc2   :  { %v158_v38 = vmul.f32 %v571_v34, %v157_v36 }
  0xc4   :  { %v159_v40 = vmul.f32 0.5, %v158_v38 }
  0xc6   :  { %v160_v42 = vsub.f32 1.5, %v159_v40 }
  0xc8   :  { %v161_v45 = vmul.f32 %v571_v34, %v160_v42 }
  0xca   :  { %v165_v47 = vsel %vm164_vm3, %v571_v34, %v161_v45 }
  0xcb   :  { %v166_v48 = vmul.f32 %v165_v47, %v148_v44 }
  0xcd   :  { %v167_v51 = vmul.f32 %v166_v48, %v150_v24  ;;  %v170_v52 = vperm.slane %v166_v48, 0 }
  0xcf   :  { %v168_v54 = vsub.f32 %v149_v50, %v167_v51  ;;  %v172_v56 = vmul.f32 %v170_v52, %v799_v6  ;;  %v173_v57 = vmul.f32 %v170_v52, %v801_v7 }
  0xd1   :  { %v175_v58 = vperm.slane %v168_v54, 0 }
  0xd3   :  { %v817_v60 = vadd.f32 %v175_v58, %v173_v57  ;;  %v819_v62 = vadd.f32 %v175_v58, %v172_v56 }
  0xd5   :  { %v822_v63 = vmul.f32 0.70710677, %v817_v60  ;;  %v825_v1 = vmul.f32 0.70710677, %v819_v62 }
  0xd7   :  { %v223_v2 = vmul.f32 %v822_v63, %v822_v63  ;;  %v183_v3 = vmul.f32 %v825_v1, %v825_v1 }
  0xd9   :  { %v224_v4 = vmin.f32 %v223_v2, 16.0  ;;  %v184_v5 = vmin.f32 %v183_v3, 16.0 }
  0xdb   :  { %v185_v6 = vmul.f32 2.1237322e-06, %v184_v5  ;;  %v196_v7 = vmul.f32 3.8918573e-05, %v184_v5  ;;  %v225_v8 = vmul.f32 2.1237322e-06, %v224_v4 }
  0xdc   :  { %v236_v9 = vmul.f32 3.8918573e-05, %v224_v4 }
  0xdd   :  { %v186_v10 = vadd.f32 0.00028619796, %v185_v6  ;;  %v197_v11 = vadd.f32 0.001143296, %v196_v7  ;;  %v226_v12 = vadd.f32 0.00028619796, %v225_v8 }
  0xde   :  { %v237_v13 = vadd.f32 0.001143296, %v236_v9 }
  0xdf   :  { %v187_v14 = vmul.f32 %v186_v10, %v184_v5  ;;  %v198_v15 = vmul.f32 %v197_v11, %v184_v5  ;;  %v227_v16 = vmul.f32 %v226_v12, %v224_v4  ;;  %v179_v12 = vmul.f32 0.5, %v819_v62 }
  0xe0   :  { %v238_v17 = vmul.f32 %v237_v13, %v224_v4 }
  0xe1   :  { %v188_v18 = vadd.f32 0.0036580483, %v187_v14  ;;  %v199_v19 = vadd.f32 0.014752088, %v198_v15  ;;  %v228_v22 = vadd.f32 0.0036580483, %v227_v16 }
  0xe2   :  { %v239_v20 = vadd.f32 0.014752088, %v238_v17  ;;  %v180_v14 = vmul.f32 0.5, %v817_v60 }
  0xe3   :  { %v200_v21 = vmul.f32 %v199_v19, %v184_v5  ;;  %v189_v24 = vmul.f32 %v188_v18, %v184_v5  ;;  %v229_v28 = vmul.f32 %v228_v22, %v224_v4 }
  0xe4   :  { %v240_v23 = vmul.f32 %v239_v20, %v224_v4 }
  0xe5   :  { %v201_v25 = vadd.f32 0.112945676, %v200_v21  ;;  %v190_v30 = vadd.f32 0.05243302, %v189_v24  ;;  %v230_v34 = vadd.f32 0.05243302, %v229_v28 }
  0xe6   :  { %v241_v26 = vadd.f32 0.112945676, %v240_v23 }
  0xe7   :  { %v202_v27 = vmul.f32 %v201_v25, %v184_v5  ;;  %v191_v36 = vmul.f32 %v190_v30, %v184_v5  ;;  %v231_v39 = vmul.f32 %v230_v34, %v224_v4 }
  0xe8   :  { %v242_v29 = vmul.f32 %v241_v26, %v224_v4 }
  0xe9   :  { %v203_v31 = vadd.f32 0.4994258, %v202_v27  ;;  %v192_v40 = vadd.f32 0.18741608, %v191_v36  ;;  %v232_v41 = vadd.f32 0.18741608, %v231_v39 }
  0xea   :  { %v243_v32 = vadd.f32 0.4994258, %v242_v29  ;;  %v455_v39 = vld [vmem:[#allocation8 + $0x70] sm:$0xff] }
  0xeb   :  { %v204_v33 = vmul.f32 %v203_v31, %v184_v5  ;;  %v193_v43 = vmul.f32 %v192_v40, %v184_v5  ;;  %v233_v46 = vmul.f32 %v232_v41, %v224_v4  ;;  %v454_v40 = vld [vmem:[#allocation8 + $0x68] sm:$0xff]  ;;  %v453_v41 = vld [vmem:[#allocation8 + $0x60] sm:$0xff] }
  0xec   :  { %v244_v35 = vmul.f32 %v243_v32, %v224_v4 }
  0xed   :  { %v205_v37 = vadd.f32 1.0, %v204_v33  ;;  %v194_v49 = vadd.f32 1.1283791, %v193_v43  ;;  %v234_v55 = vadd.f32 1.1283791, %v233_v46  ;;  %v452_v43 = vld [vmem:[#allocation8 + $0x58] sm:$0xff] }
  0xee   :  { %v245_v38 = vadd.f32 1.0, %v244_v35 }
  0xef   :  { %572 = vrcp.f32 %v205_v37  ;;  %v217_v50 = vand.u32 2147483648, %v205_v37  ;;  %v215_v53 = vand.u32 2147483647, %v205_v37  ;;  %vm211_vm6 = vweird.f32 %v205_v37 }
  0xf0   :  { %574 = vrcp.f32 %v245_v38  ;;  %v257_v54 = vand.u32 2147483648, %v245_v38  ;;  %v255_v57 = vand.u32 2147483647, %v245_v38  ;;  %vm251_vm8 = vweird.f32 %v245_v38 }
  0xf1   :  { %v218_v59 = vor.u32 1.1754944e-38, %v217_v50  ;;  %v195_v0 = vmul.f32 %v194_v49, %v825_v1  ;;  %vm216_vm9 = vcmp.eq.f32.partialorder %v215_v53, 8.507059e+37  ;;  %v235_v5 = vmul.f32 %v234_v55, %v822_v63  ;;  %v449_v49 = vld [vmem:[#allocation8 + $0x40] sm:$0xff] }
  0xf2   :  { %v258_v3 = vor.u32 1.1754944e-38, %v257_v54  ;;  %vm256_vm11 = vcmp.eq.f32.partialorder %v255_v57, 8.507059e+37  ;;  %v447_v54 = vld [vmem:[#allocation8 + $0x30] sm:$0xff]  ;;  %v446_v57 = vld [vmem:[#allocation8 + $0x28] sm:$0xff] }
  0xf5   :  { %v573_v42 = vpop.eup %572 }
  0xf6   :  { %v575_v44 = vpop.eup %574  ;;  %v207_v45 = vmul.f32 %v573_v42, %v205_v37  ;;  %vm212_vm4 = vweird.f32 %v573_v42 }
  0xf7   :  { %v247_v47 = vmul.f32 %v575_v44, %v245_v38  ;;  %vm252_vm5 = vweird.f32 %v575_v44  ;;  %vm213_vm7 = vmor %vm211_vm6, %vm212_vm4  ;;  %v456_v38 = vld [vmem:[#allocation8 + $0x78] sm:$0xff] }
  0xf8   :  { %v208_v48 = vsub.f32 1.0, %v207_v45  ;;  %vm253_vm10 = vmor %vm251_vm8, %vm252_vm5  ;;  %461 = vmatpush.msra.mxu2 %v456_v38  ;;  %v451_v45 = vld [vmem:[#allocation8 + $0x50] sm:$0xff] }
  0xf9   :  { %v248_v51 = vsub.f32 1.0, %v247_v47  ;;  %v450_v47 = vld [vmem:[#allocation8 + $0x48] sm:$0xff] }
  0xfa   :  { %v209_v52 = vmul.f32 %v573_v42, %v208_v48  ;;  %462 = vmatpush.msra.mxu2 %v455_v39 }
  0xfb   :  { %v249_v56 = vmul.f32 %v575_v44, %v248_v51  ;;  %v448_v51 = vld [vmem:[#allocation8 + $0x38] sm:$0xff] }
  0xfc   :  { %v210_v58 = vadd.f32 %v573_v42, %v209_v52  ;;  %463 = vmatpush.msra.mxu2 %v454_v40  ;;  %v322_v52 = vld [vmem:[%s887_s5] sm:$0x1] }
  0xfd   :  { %v250_v61 = vadd.f32 %v575_v44, %v249_v56 }
  0xfe   :  { %v214_v2 = vsel %vm213_vm7, %v573_v42, %v210_v58  ;;  %464 = vmatpush.msra.mxu2 %v453_v41  ;;  %v323_v58 = vld [vmem:[%s888_s6] sm:$0x1] }
  0xff   :  { %v219_v4 = vsel %vm216_vm9, %v218_v59, %v214_v2  ;;  %v254_v6 = vsel %vm253_vm10, %v575_v44, %v250_v61 }
 0x100   :  { %v220_v7 = vmul.f32 %v219_v4, %v195_v0  ;;  %v259_v8 = vsel %vm256_vm11, %v258_v3, %v254_v6  ;;  %465 = vmatpush.msra.mxu2 %v452_v43  ;;  %v445_v0 = vld [vmem:[#allocation8 + $0x20] sm:$0xff]  ;;  %v444_v3 = vld [vmem:[#allocation8 + $0x18] sm:$0xff] }
 0x101   :  { %v260_v9 = vmul.f32 %v259_v8, %v235_v5 }
 0x102   :  { %v542_v10 = vclamps-f32 %v220_v7, 1.0  ;;  %466 = vmatpush.msra.mxu2 %v451_v45  ;;  %v443_v7 = vld [vmem:[#allocation8 + $0x10] sm:$0xff] }
 0x103   :  { %v543_v11 = vclamps-f32 %v260_v9, 1.0  ;;  %v442_v9 = vld [vmem:[#allocation8 + $0x8] sm:$0xff] }
 0x104   :  { %v263_v13 = vadd.f32 1.0, %v542_v10  ;;  %467 = vmatpush.msra.mxu2 %v450_v47 }
 0x105   :  { %v264_v1 = vadd.f32 1.0, %v543_v11 }
 0x106   :  { %v265_v15 = vmul.f32 %v263_v13, %v179_v12  ;;  %468 = vmatpush.msra.mxu2 %v449_v49  ;;  %v441_v12 = vld [vmem:[#allocation8] sm:$0xff] }
 0x107   :  { %v266_v16 = vmul.f32 %v264_v1, %v180_v14 }
 0x108   :  { %299 = vmatmul.f32.vlgmr.msra.gmra.mxu1 %v265_v15  ;;  %469 = vmatpush.msra.mxu2 %v448_v51 }
 0x109   :  { %302 = vmatmul.f32.vlgmr.msra.gmra.mxu3 %v266_v16 }
 0x10a   :  { %470 = vmatpush.msra.mxu2 %v447_v54 }
 0x10c   :  { %471 = vmatpush.msra.mxu2 %v446_v57 }
 0x10e   :  { %472 = vmatpush.msra.mxu2 %v445_v0 }
 0x110   :  { %473 = vmatpush.msra.mxu2 %v444_v3 }
 0x112   :  { %474 = vmatpush.msra.mxu2 %v443_v7 }
 0x114   :  { %475 = vmatpush.msra.mxu2 %v442_v9 }
 0x116   :  { %476 = vmatpush.msra.mxu2 %v441_v12 }
 0x185   :  { %v835_v17 = vpop.f32.mrf.mxu1 }
 0x186   :  { %v313_v18 = vmul.f32 %v835_v17, %v835_v17 }
 0x18c   :  { %v837_v63 = vpop.f32.mrf.mxu3 }
 0x18d   :  { %v306_v19 = vadd.f32 %v837_v63, %v835_v17  ;;  %v314_v62 = vmul.f32 %v837_v63, %v837_v63 }
 0x18f   :  { %v307_v20 = vrot.slane %v306_v19, 4  ;;  %v315_v60 = vadd.f32 %v314_v62, %v313_v18 }
 0x191   :  { %v308_v21 = vadd.f32 %v307_v20, %v306_v19  ;;  %v316_v22 = vrot.slane %v315_v60, 4 }
 0x193   :  { %v309_v23 = vrot.slane %v308_v21, 2  ;;  %v317_v24 = vadd.f32 %v316_v22, %v315_v60 }
 0x195   :  { %v310_v25 = vadd.f32 %v309_v23, %v308_v21  ;;  %v318_v26 = vrot.slane %v317_v24, 2 }
 0x197   :  { %v311_v27 = vrot.slane %v310_v25, 1  ;;  %v319_v28 = vadd.f32 %v318_v26, %v317_v24 }
 0x199   :  { %v312_v29 = vadd.f32 %v311_v27, %v310_v25  ;;  %v320_v30 = vrot.slane %v319_v28, 1 }
 0x19b   :  { %v321_v31 = vadd.f32 %v320_v30, %v319_v28  ;;  %v324_v32 = vmul.f32 0.0625, %v312_v29 }
 0x19d   :  { %v325_v33 = vmul.f32 0.0625, %v321_v31  ;;  %v326_v34 = vmul.f32 %v324_v32, %v324_v32 }
 0x19f   :  { %v327_v35 = vsub.f32 %v325_v33, %v326_v34 }
 0x1a1   :  { %v328_v36 = vmax.f32 %v327_v35, 0.0 }
 0x1a3   :  { %v329_v37 = vadd.f32 1e-05, %v328_v36 }
 0x1a5   :  { %576 = vrsqrt.f32 %v329_v37  ;;  %vm336_vm13 = vweird.f32 %v329_v37 }
 0x1ab   :  { %v577_v42 = vpop.eup %576 }
 0x1ac   :  { %v331_v44 = vmul.f32 %v577_v42, %v329_v37  ;;  %vm337_vm12 = vweird.f32 %v577_v42 }
 0x1ad   :  { %vm338_vm14 = vmor %vm336_vm13, %vm337_vm12 }
 0x1ae   :  { %v332_v46 = vmul.f32 %v577_v42, %v331_v44 }
 0x1b0   :  { %v333_v48 = vmul.f32 0.5, %v332_v46 }
 0x1b2   :  { %v334_v50 = vsub.f32 1.5, %v333_v48 }
 0x1b4   :  { %v335_v53 = vmul.f32 %v577_v42, %v334_v50 }
 0x1b6   :  { %v339_v55 = vsel %vm338_vm14, %v577_v42, %v335_v53 }
 0x1b7   :  { %v340_v56 = vmul.f32 %v339_v55, %v322_v52 }
 0x1b9   :  { %v341_v59 = vmul.f32 %v340_v56, %v324_v32  ;;  %v344_v61 = vperm.slane %v340_v56, 0 }
 0x1bb   :  { %v342_v2 = vsub.f32 %v323_v58, %v341_v59  ;;  %v346_v4 = vmul.f32 %v344_v61, %v835_v17  ;;  %v347_v5 = vmul.f32 %v344_v61, %v837_v63 }
 0x1bd   :  { %v349_v6 = vperm.slane %v342_v2, 0 }
 0x1bf   :  { %v853_v8 = vadd.f32 %v349_v6, %v347_v5  ;;  %v855_v10 = vadd.f32 %v349_v6, %v346_v4 }
 0x1c1   :  { %v858_v11 = vmul.f32 0.70710677, %v853_v8  ;;  %v861_v13 = vmul.f32 0.70710677, %v855_v10 }
 0x1c3   :  { %v397_v14 = vmul.f32 %v858_v11, %v858_v11  ;;  %v357_v1 = vmul.f32 %v861_v13, %v861_v13 }
 0x1c5   :  { %v398_v15 = vmin.f32 %v397_v14, 16.0  ;;  %v358_v16 = vmin.f32 %v357_v1, 16.0 }
 0x1c7   :  { %v359_v17 = vmul.f32 2.1237322e-06, %v358_v16  ;;  %v370_v63 = vmul.f32 3.8918573e-05, %v358_v16  ;;  %v399_v18 = vmul.f32 2.1237322e-06, %v398_v15 }
 0x1c8   :  { %v410_v19 = vmul.f32 3.8918573e-05, %v398_v15 }
 0x1c9   :  { %v360_v62 = vadd.f32 0.00028619796, %v359_v17  ;;  %v371_v20 = vadd.f32 0.001143296, %v370_v63  ;;  %v400_v60 = vadd.f32 0.00028619796, %v399_v18 }
 0x1ca   :  { %v411_v21 = vadd.f32 0.001143296, %v410_v19 }
 0x1cb   :  { %v361_v22 = vmul.f32 %v360_v62, %v358_v16  ;;  %v372_v23 = vmul.f32 %v371_v20, %v358_v16  ;;  %v401_v24 = vmul.f32 %v400_v60, %v398_v15  ;;  %v353_v20 = vmul.f32 0.5, %v855_v10 }
 0x1cc   :  { %v412_v25 = vmul.f32 %v411_v21, %v398_v15 }
 0x1cd   :  { %v362_v26 = vadd.f32 0.0036580483, %v361_v22  ;;  %v373_v27 = vadd.f32 0.014752088, %v372_v23  ;;  %v402_v30 = vadd.f32 0.0036580483, %v401_v24 }
 0x1ce   :  { %v413_v28 = vadd.f32 0.014752088, %v412_v25  ;;  %v354_v23 = vmul.f32 0.5, %v853_v8  ;;  %v569_v25 = vld [vmem:[%s890_s8] ss:$0 sm:$0xff]  ;;  %v484_v8 = vlaneseq  ;;  %s724_s8 = smov [#allocation10]  }
 0x1cf   :  { %v374_v29 = vmul.f32 %v373_v27, %v358_v16  ;;  %v363_v32 = vmul.f32 %v362_v26, %v358_v16  ;;  %v403_v36 = vmul.f32 %v402_v30, %v398_v15  ;;  %s523_s12 = sshll.u32 %s724_s8, 4  ;;  %s524_s12 = int_to_ptr.vmem [resolvable:$true] %s523_s12 }
 0x1d0   :  { %v414_v31 = vmul.f32 %v413_v28, %v398_v15 }
 0x1d1   :  { %v375_v33 = vadd.f32 0.112945676, %v374_v29  ;;  %v364_v38 = vadd.f32 0.05243302, %v363_v32  ;;  %v404_v42 = vadd.f32 0.05243302, %v403_v36 }
 0x1d2   :  { %v415_v34 = vadd.f32 0.112945676, %v414_v31 }
 0x1d3   :  { %v376_v35 = vmul.f32 %v375_v33, %v358_v16  ;;  %v365_v44 = vmul.f32 %v364_v38, %v358_v16  ;;  %v405_v47 = vmul.f32 %v404_v42, %v398_v15 }
 0x1d4   :  { %v416_v37 = vmul.f32 %v415_v34, %v398_v15 }
 0x1d5   :  { %v377_v39 = vadd.f32 0.4994258, %v376_v35  ;;  %v366_v48 = vadd.f32 0.18741608, %v365_v44  ;;  %v406_v49 = vadd.f32 0.18741608, %v405_v47 }
 0x1d6   :  { %v417_v40 = vadd.f32 0.4994258, %v416_v37  ;;  %v485_v37 = vand.u32 127, %v484_v8 }
 0x1d7   :  { %v378_v41 = vmul.f32 %v377_v39, %v358_v16  ;;  %v367_v51 = vmul.f32 %v366_v48, %v358_v16  ;;  %v407_v56 = vmul.f32 %v406_v49, %v398_v15 }
 0x1d8   :  { %v418_v43 = vmul.f32 %v417_v40, %v398_v15  ;;  %vm486_vm8 = vcmp.lt.s32.totalorder %v485_v37, 64 }
 0x1d9   :  { %v379_v45 = vadd.f32 1.0, %v378_v41  ;;  %v368_v57 = vadd.f32 1.1283791, %v367_v51  ;;  %v408_v6 = vadd.f32 1.1283791, %v407_v56 }
 0x1da   :  { %v419_v46 = vadd.f32 1.0, %v418_v43 }
 0x1db   :  { %578 = vrcp.f32 %v379_v45  ;;  %v391_v58 = vand.u32 2147483648, %v379_v45  ;;  %v389_v0 = vand.u32 2147483647, %v379_v45  ;;  %vm385_vm1 = vweird.f32 %v379_v45 }
 0x1dc   :  { %580 = vrcp.f32 %v419_v46  ;;  %v431_v2 = vand.u32 2147483648, %v419_v46  ;;  %v429_v4 = vand.u32 2147483647, %v419_v46  ;;  %vm425_vm3 = vweird.f32 %v419_v46 }
 0x1dd   :  { %v392_v7 = vor.u32 1.1754944e-38, %v391_v58  ;;  %v369_v12 = vmul.f32 %v368_v57, %v861_v13  ;;  %vm390_vm4 = vcmp.eq.f32.partialorder %v389_v0, 8.507059e+37  ;;  %v409_v63 = vmul.f32 %v408_v6, %v858_v11 }
 0x1de   :  { %v432_v1 = vor.u32 1.1754944e-38, %v431_v2  ;;  %vm430_vm6 = vcmp.eq.f32.partialorder %v429_v4, 8.507059e+37 }
 0x1e1   :  { %v579_v50 = vpop.eup %578 }
 0x1e2   :  { %v581_v52 = vpop.eup %580  ;;  %v381_v53 = vmul.f32 %v579_v50, %v379_v45  ;;  %vm386_vm15 = vweird.f32 %v579_v50 }
 0x1e3   :  { %v421_v54 = vmul.f32 %v581_v52, %v419_v46  ;;  %vm426_vm0 = vweird.f32 %v581_v52  ;;  %vm387_vm2 = vmor %vm385_vm1, %vm386_vm15 }
 0x1e4   :  { %v382_v55 = vsub.f32 1.0, %v381_v53  ;;  %vm427_vm5 = vmor %vm425_vm3, %vm426_vm0 }
 0x1e5   :  { %v422_v59 = vsub.f32 1.0, %v421_v54 }
 0x1e6   :  { %v383_v61 = vmul.f32 %v579_v50, %v382_v55 }
 0x1e7   :  { %v423_v3 = vmul.f32 %v581_v52, %v422_v59 }
 0x1e8   :  { %v384_v5 = vadd.f32 %v579_v50, %v383_v61 }
 0x1e9   :  { %v424_v9 = vadd.f32 %v581_v52, %v423_v3 }
 0x1ea   :  { %v388_v14 = vsel %vm387_vm2, %v579_v50, %v384_v5 }
 0x1eb   :  { %v393_v15 = vsel %vm390_vm4, %v392_v7, %v388_v14  ;;  %v428_v16 = vsel %vm427_vm5, %v581_v52, %v424_v9 }
 0x1ec   :  { %v394_v17 = vmul.f32 %v393_v15, %v369_v12  ;;  %v433_v18 = vsel %vm430_vm6, %v432_v1, %v428_v16 }
 0x1ed   :  { %v434_v62 = vmul.f32 %v433_v18, %v409_v63 }
 0x1ee   :  { %v544_v19 = vclamps-f32 %v394_v17, 1.0 }
 0x1ef   :  { %v545_v22 = vclamps-f32 %v434_v62, 1.0 }
 0x1f0   :  { %v437_v60 = vadd.f32 1.0, %v544_v19 }
 0x1f1   :  { %v438_v13 = vadd.f32 1.0, %v545_v22 }
 0x1f2   :  { %v439_v21 = vmul.f32 %v437_v60, %v353_v20 }
 0x1f3   :  { %v440_v24 = vmul.f32 %v438_v13, %v354_v23 }
 0x1f4   :  { %477 = vmatmul.f32.vlgmr.msra.gmra.mxu2 %v439_v21 }
 0x1fc   :  { %480 = vmatmul.f32.gmra.mxu2 %v440_v24 }
 0x277   :  { %v478_v26 = vpop.f32.mrf.mxu2 }
 0x278   :  { %v479_v11 = vadd.f32 %v569_v25, %v478_v26 }
 0x27a   :  { %v489_v27 = vmin.f32 %v479_v11, 20.0  ;;  %vm487_vm9 = vcmp.gt.f32.partialorder %v479_v11, 20.0 }
 0x27c   :  { %v491_v28 = vmul.f32 1.442695, %v489_v27 }
 0x27e   :  { %582 = vpow2.f32 %v491_v28 }
 0x27f   :  { %v481_v29 = vpop.f32.mrf.mxu2 }
 0x280   :  { %v482_v10 = vadd.f32 %v569_v25, %v481_v29 }
 0x282   :  { %v490_v30 = vmin.f32 %v482_v10, 20.0  ;;  %vm488_vm11 = vcmp.gt.f32.partialorder %v482_v10, 20.0 }
 0x284   :  { %v583_v31 = vpop.eup %582  ;;  %v493_v32 = vmul.f32 1.442695, %v490_v30 }
 0x285   :  { %v495_v33 = vadd.f32 1.0, %v583_v31  ;;  %v498_v34 = vmul.f32 -0.5, %v583_v31  ;;  %v501_v36 = vand.u32 2147483647, %v583_v31 }
 0x286   :  { %584 = vpow2.f32 %v493_v32 }
 0x287   :  { %586 = vlog2.f32 %v495_v33  ;;  %v499_v35 = vadd.f32 1.0, %v498_v34  ;;  %vm502_vm7 = vcmp.lt.f32.partialorder %v501_v36, 0.0004427343 }
 0x289   :  { %v500_v42 = vmul.f32 %v583_v31, %v499_v35 }
 0x28c   :  { %v585_v38 = vpop.eup %584 }
 0x28d   :  { %v587_v39 = vpop.eup %586  ;;  %v504_v40 = vadd.f32 1.0, %v585_v38  ;;  %v507_v43 = vmul.f32 -0.5, %v585_v38  ;;  %v510_v48 = vand.u32 2147483647, %v585_v38 }
 0x28e   :  { %v497_v41 = vmul.f32 0.6931472, %v587_v39 }
 0x28f   :  { %588 = vlog2.f32 %v504_v40  ;;  %v508_v46 = vadd.f32 1.0, %v507_v43  ;;  %vm511_vm10 = vcmp.lt.f32.partialorder %v510_v48, 0.0004427343 }
 0x290   :  { %v503_v44 = vsel %vm502_vm7, %v500_v42, %v497_v41 }
 0x291   :  { %v513_v45 = vsel %vm487_vm9, %v479_v11, %v503_v44  ;;  %v509_v51 = vmul.f32 %v585_v38, %v508_v46 }
 0x292   :  { %v515_v47 = vsel %vm486_vm8, %v479_v11, %v513_v45 }
 0x293   :  { %517 = vst [vmem:[#allocation10] sm:$0xff] %v515_v47 }
 0x295   :  { %v589_v49 = vpop.eup %588 }
 0x296   :  { %v506_v50 = vmul.f32 0.6931472, %v589_v49 }
 0x298   :  { %v512_v52 = vsel %vm511_vm10, %v509_v51, %v506_v50 }
 0x299   :  { %v514_v53 = vsel %vm488_vm11, %v482_v10, %v512_v52 }
 0x29a   :  { %v516_v54 = vsel %vm486_vm8, %v482_v10, %v514_v53 }
 0x29b   :  { %518 = vst [vmem:[#allocation10 + $0x8] sm:$0xff] %v516_v54 }
 0x29c   :  { %531 = dma.vmem_to_hbm [thread:$0]  %s524_s12, 256, %s526_s15, [#allocation4], %s719_s17, %s719_s17, %s720_s18  }
 0x29d   :  { %716 = dma.done.wait [#allocation4], 256  }
 0x29e   :  { %717 = vsyncadd [#allocation4], 4294967040 }
 0x29f   :  { %536 = vsyncpa [#allocation3], 1 }
 0x2a0   :  { %537 = vsyncpa [#allocation6], 1 }
 0x2a1   :  { %538 = vsyncpa [#allocation9], 1 }
 0x2a2   :  { %539 = vsyncpa [#allocation4], 1 }

</bundles_post_ra>
